<compile_context>
chip_gen: v7x
topology: tpu7x:2x2x1
jax: 0.10.0
libtpu: 0.0.40
codegen_flags: <defaults>
</compile_context>

<pallas_src>
import jax
import jax.numpy as jnp
from jax.experimental import pallas as pl
from jax.experimental.pallas import tpu as pltpu


def _disc_kernel(x_ref, w1t_ref, b1_ref, w2t_ref, b2_ref, w3_ref, b3_ref, o_ref):
    # x_ref: (C, tm) tile — channels on sublanes, pixels on lanes.
    h0 = jnp.maximum(x_ref[...], 0.0)                                    # F.relu(x)
    h1 = jnp.dot(w1t_ref[...], h0,
                 preferred_element_type=jnp.float32) + b1_ref[...]       # conv1
    h1 = jnp.maximum(h1, 0.0)                                            # F.relu
    h2 = jnp.dot(w2t_ref[...], h1,
                 preferred_element_type=jnp.float32) + b2_ref[...]       # conv2
    # classifier: output width 1 -> VPU weighted sum + sublane reduce (XLU)
    # instead of a 1/128-utilized MXU matmul.
    out = jnp.sum(w3_ref[...] * h2, axis=0, keepdims=True) + b3_ref[...]
    o_ref[...] = out.astype(o_ref.dtype)


def fc_discriminator2(x_nchw, params, *, tm=8192):
    """x_nchw: (N, C, H, W) float32. Returns (N, 1, H, W)."""
    w1, b1, w2, b2, w3, b3 = params
    N, C, H, W = x_nchw.shape
    feat = w1.shape[1]

    # NCHW -> (C, M): cheap major-dim permutation; pixels become the lane axis.
    M = N * H * W
    x_mat = jnp.transpose(x_nchw, (1, 0, 2, 3)).reshape(C, M)

    # Lane-dense tile: tm a multiple of 128, capped by (rounded-up) M.
    tm = max(128, min(int(tm), pl.cdiv(M, 128) * 128))
    M_pad = pl.cdiv(M, tm) * tm
    if M_pad != M:
        x_mat = jnp.pad(x_mat, ((0, 0), (0, M_pad - M)))

    # Weights as (C_out, C_in); biases / classifier weight as columns so they
    # broadcast across the lane (pixel) axis.
    w1t = jnp.transpose(w1)            # (feat, C)
    w2t = jnp.transpose(w2)            # (feat, feat)
    b1c = b1.reshape(feat, 1)
    b2c = b2.reshape(feat, 1)
    w3c = w3.reshape(feat, 1)
    b3c = b3.reshape(1, 1)

    grid = (M_pad // tm,)
    cost = pl.CostEstimate(
        flops=2 * M_pad * (C * feat + feat * feat + feat),
        transcendentals=0,
        bytes_accessed=4 * (M_pad * (C + 1) + C * feat + feat * feat + 3 * feat + 1),
    )

    out_mat = pl.pallas_call(
        _disc_kernel,
        out_shape=jax.ShapeDtypeStruct((1, M_pad), jnp.float32),
        grid_spec=pltpu.PrefetchScalarGridSpec(
            num_scalar_prefetch=0,
            grid=grid,
            in_specs=[
                pl.BlockSpec((C, tm),      lambda i: (0, i)),   # x tile (lane-dense)
                pl.BlockSpec((feat, C),    lambda i: (0, 0)),   # w1^T (resident)
                pl.BlockSpec((feat, 1),    lambda i: (0, 0)),   # b1
                pl.BlockSpec((feat, feat), lambda i: (0, 0)),   # w2^T (resident)
                pl.BlockSpec((feat, 1),    lambda i: (0, 0)),   # b2
                pl.BlockSpec((feat, 1),    lambda i: (0, 0)),   # w3 column
                pl.BlockSpec((1, 1),       lambda i: (0, 0)),   # b3
            ],
            out_specs=pl.BlockSpec((1, tm), lambda i: (0, i)),  # lane-dense output
        ),
        compiler_params=pltpu.CompilerParams(
            dimension_semantics=("parallel",)),
        cost_estimate=cost,
    )(x_mat, w1t, b1c, w2t, b2c, w3c, b3c)

    # (1, M_pad) -> drop padding -> (N, H, W) -> (N, 1, H, W)
    return out_mat[0, :M].reshape(N, H, W)[:, None, :, :]
    # TODO(synk): optional bf16 cast of x/weights on v6e/v7x would halve HBM
    # bytes on the memory-bound input stream (needs looser test tolerance).


def init_params(key, num_classes, feat_dim):
    """Deterministic synthetic params. Weights stored as (C_in, C_out)."""
    k1, k2, k3, k4, k5, k6 = jax.random.split(key, 6)
    s1 = 1.0 / jnp.sqrt(num_classes)
    s2 = 1.0 / jnp.sqrt(feat_dim)
    w1 = jax.random.uniform(k1, (num_classes, feat_dim), jnp.float32, -s1, s1)
    b1 = jax.random.uniform(k2, (feat_dim,), jnp.float32, -s1, s1)
    w2 = jax.random.uniform(k3, (feat_dim, feat_dim), jnp.float32, -s2, s2)
    b2 = jax.random.uniform(k4, (feat_dim,), jnp.float32, -s2, s2)
    w3 = jax.random.uniform(k5, (feat_dim, 1), jnp.float32, -s2, s2)
    b3 = jax.random.uniform(k6, (1,), jnp.float32, -s2, s2)
    return (w1, b1, w2, b2, w3, b3)


def _reference(x_nchw, params):
    """Plain-JAX reference matching PyTorch semantics (1x1 convs as matmuls)."""
    w1, b1, w2, b2, w3, b3 = params
    x = jnp.transpose(x_nchw, (0, 2, 3, 1))            # NHWC
    h = jnp.maximum(x, 0.0) @ w1 + b1
    h = jnp.maximum(h, 0.0) @ w2 + b2
    o = h @ w3 + b3
    return jnp.transpose(o, (0, 3, 1, 2))               # NCHW


if __name__ == "__main__":
    num_classes = 4
    feat_dim = 32
    N, H, W = 2, 16, 16

    key = jax.random.PRNGKey(0)
    kx, kp = jax.random.split(key)
    x = jax.random.normal(kx, (N, num_classes, H, W), jnp.float32)
    params = init_params(kp, num_classes, feat_dim)

    out = jax.block_until_ready(fc_discriminator2(x, params))
    ref = jax.block_until_ready(_reference(x, params))

    assert out.shape == (N, 1, H, W), out.shape
    err = float(jnp.max(jnp.abs(out - ref)))
    assert jnp.allclose(out, ref, atol=1e-4, rtol=1e-4), err
    print("KERNEL_OK")
</pallas_src>

<mosaic_0001>
module attributes {stable_mosaic.version = 11 : i64} {
  func.func @_disc_kernel(%arg0: i32, %arg1: memref<4x512xf32, #tpu.memory_space<vmem>>, %arg2: memref<32x4xf32, #tpu.memory_space<vmem>>, %arg3: memref<32x1xf32, #tpu.memory_space<vmem>>, %arg4: memref<32x32xf32, #tpu.memory_space<vmem>>, %arg5: memref<32x1xf32, #tpu.memory_space<vmem>>, %arg6: memref<32x1xf32, #tpu.memory_space<vmem>>, %arg7: memref<1x1xf32, #tpu.memory_space<vmem>>, %arg8: memref<1x512xf32, #tpu.memory_space<vmem>>) attributes {dimension_semantics = [#tpu.dimension_semantics<parallel>], iteration_bounds = array<i64: 1>, scalar_prefetch = 0 : i64, scratch_operands = 0 : i64, tpu.core_type = #tpu.core_type<tc>, window_params = [{transform_indices = @transform_0, window_bounds = array<i64: 4, 512>}, {pipeline_mode = #tpu.pipeline_mode<synchronous>, transform_indices = @transform_1, window_bounds = array<i64: 32, 4>}, {pipeline_mode = #tpu.pipeline_mode<synchronous>, transform_indices = @transform_2, window_bounds = array<i64: 32, 1>}, {pipeline_mode = #tpu.pipeline_mode<synchronous>, transform_indices = @transform_3, window_bounds = array<i64: 32, 32>}, {pipeline_mode = #tpu.pipeline_mode<synchronous>, transform_indices = @transform_4, window_bounds = array<i64: 32, 1>}, {pipeline_mode = #tpu.pipeline_mode<synchronous>, transform_indices = @transform_5, window_bounds = array<i64: 32, 1>}, {pipeline_mode = #tpu.pipeline_mode<synchronous>, transform_indices = @transform_6, window_bounds = array<i64: 1, 1>}, {transform_indices = @transform_7, window_bounds = array<i64: 1, 512>}]} {
    %c0 = arith.constant 0 : index
    %c0_0 = arith.constant 0 : index
    %0 = vector.load %arg1[%c0, %c0_0] : memref<4x512xf32, #tpu.memory_space<vmem>>, vector<4x512xf32>
    %cst = arith.constant 0.000000e+00 : f32
    %1 = vector.broadcast %cst : f32 to vector<4x512xf32>
    %2 = arith.maximumf %0, %1 : vector<4x512xf32>
    %c0_1 = arith.constant 0 : index
    %c0_2 = arith.constant 0 : index
    %3 = vector.load %arg2[%c0_1, %c0_2] : memref<32x4xf32, #tpu.memory_space<vmem>>, vector<32x4xf32>
    %cst_3 = arith.constant dense<0.000000e+00> : vector<32x512xf32>
    %4 = tpu.matmul %3, %2, %cst_3 {dimension_numbers = #tpu.dot_dimension_numbers<[1], [0], [0], [1], [0, 0, 1, 1], [], []>} : vector<32x4xf32>, vector<4x512xf32>, vector<32x512xf32> -> vector<32x512xf32>
    %c0_4 = arith.constant 0 : index
    %c0_5 = arith.constant 0 : index
    %5 = vector.load %arg3[%c0_4, %c0_5] : memref<32x1xf32, #tpu.memory_space<vmem>>, vector<32x1xf32>
    %6 = vector.broadcast %5 : vector<32x1xf32> to vector<32x512xf32>
    %7 = arith.addf %4, %6 : vector<32x512xf32>
    %cst_6 = arith.constant 0.000000e+00 : f32
    %8 = vector.broadcast %cst_6 : f32 to vector<32x512xf32>
    %9 = arith.maximumf %7, %8 : vector<32x512xf32>
    %c0_7 = arith.constant 0 : index
    %c0_8 = arith.constant 0 : index
    %10 = vector.load %arg4[%c0_7, %c0_8] : memref<32x32xf32, #tpu.memory_space<vmem>>, vector<32x32xf32>
    %cst_9 = arith.constant dense<0.000000e+00> : vector<32x512xf32>
    %11 = tpu.matmul %10, %9, %cst_9 {dimension_numbers = #tpu.dot_dimension_numbers<[1], [0], [0], [1], [0, 0, 1, 1], [], []>} : vector<32x32xf32>, vector<32x512xf32>, vector<32x512xf32> -> vector<32x512xf32>
    %c0_10 = arith.constant 0 : index
    %c0_11 = arith.constant 0 : index
    %12 = vector.load %arg5[%c0_10, %c0_11] : memref<32x1xf32, #tpu.memory_space<vmem>>, vector<32x1xf32>
    %13 = vector.broadcast %12 : vector<32x1xf32> to vector<32x512xf32>
    %14 = arith.addf %11, %13 : vector<32x512xf32>
    %c0_12 = arith.constant 0 : index
    %c0_13 = arith.constant 0 : index
    %15 = vector.load %arg6[%c0_12, %c0_13] : memref<32x1xf32, #tpu.memory_space<vmem>>, vector<32x1xf32>
    %16 = vector.broadcast %15 : vector<32x1xf32> to vector<32x512xf32>
    %17 = arith.mulf %16, %14 : vector<32x512xf32>
    %cst_14 = arith.constant dense<0.000000e+00> : vector<512xf32>
    %18 = vector.multi_reduction <add>, %17, %cst_14 [0] : vector<32x512xf32> to vector<512xf32>
    %19 = vector.shape_cast %18 : vector<512xf32> to vector<1x512xf32>
    %c0_15 = arith.constant 0 : index
    %c0_16 = arith.constant 0 : index
    %20 = vector.load %arg7[%c0_15, %c0_16] : memref<1x1xf32, #tpu.memory_space<vmem>>, vector<1x1xf32>
    %21 = vector.broadcast %20 : vector<1x1xf32> to vector<1x512xf32>
    %22 = arith.addf %19, %21 : vector<1x512xf32>
    %c0_17 = arith.constant 0 : index
    %c0_18 = arith.constant 0 : index
    %23 = vector.load %arg8[%c0_17, %c0_18] : memref<1x512xf32, #tpu.memory_space<vmem>>, vector<1x512xf32>
    tpu.vector_store %arg8[%c0_17, %c0_18], %22 {strides = array<i32>} : memref<1x512xf32, #tpu.memory_space<vmem>>, vector<1x512xf32>,
    return
  }
  func.func @transform_0(%arg0: i32) -> (i32, i32) {
    %c0_i32 = arith.constant 0 : i32
    %c0_i32_0 = arith.constant 0 : i32
    return %c0_i32, %arg0 : i32, i32
  }
  func.func @transform_1(%arg0: i32) -> (i32, i32) {
    %c0_i32 = arith.constant 0 : i32
    %c0_i32_0 = arith.constant 0 : i32
    %c0_i32_1 = arith.constant 0 : i32
    return %c0_i32, %c0_i32_0 : i32, i32
  }
  func.func @transform_2(%arg0: i32) -> (i32, i32) {
    %c0_i32 = arith.constant 0 : i32
    %c0_i32_0 = arith.constant 0 : i32
    %c0_i32_1 = arith.constant 0 : i32
    return %c0_i32, %c0_i32_0 : i32, i32
  }
  func.func @transform_3(%arg0: i32) -> (i32, i32) {
    %c0_i32 = arith.constant 0 : i32
    %c0_i32_0 = arith.constant 0 : i32
    %c0_i32_1 = arith.constant 0 : i32
    return %c0_i32, %c0_i32_0 : i32, i32
  }
  func.func @transform_4(%arg0: i32) -> (i32, i32) {
    %c0_i32 = arith.constant 0 : i32
    %c0_i32_0 = arith.constant 0 : i32
    %c0_i32_1 = arith.constant 0 : i32
    return %c0_i32, %c0_i32_0 : i32, i32
  }
  func.func @transform_5(%arg0: i32) -> (i32, i32) {
    %c0_i32 = arith.constant 0 : i32
    %c0_i32_0 = arith.constant 0 : i32
    %c0_i32_1 = arith.constant 0 : i32
    return %c0_i32, %c0_i32_0 : i32, i32
  }
  func.func @transform_6(%arg0: i32) -> (i32, i32) {
    %c0_i32 = arith.constant 0 : i32
    %c0_i32_0 = arith.constant 0 : i32
    %c0_i32_1 = arith.constant 0 : i32
    return %c0_i32, %c0_i32_0 : i32, i32
  }
  func.func @transform_7(%arg0: i32) -> (i32, i32) {
    %c0_i32 = arith.constant 0 : i32
    %c0_i32_0 = arith.constant 0 : i32
    return %c0_i32, %arg0 : i32, i32
  }
}

</mosaic_0001>

<bundles_post_ra>
// kernel: tpu_custom_call.1
= control target key start
LH: loop header
LB: loop body
LE: loop exit
PB: predicated region body
PF: predicated region fallthrough
CT: control target
= control target key end

     0   :  { %s861_s0 = inlined_call_operand.vmem [shape: f32[4,512], index: 0, kind: input, shape index: {}]   ;;  %s862_s1 = inlined_call_operand.vmem [shape: f32[32,4], index: 1, kind: input, shape index: {}]   ;;  %s863_s2 = inlined_call_operand.vmem [shape: f32[32,1], index: 2, kind: input, shape index: {}]   ;;  %s864_s3 = inlined_call_operand.vmem [shape: f32[32,32], index: 3, kind: input, shape index: {}]   ;;  %s865_s4 = inlined_call_operand.vmem [shape: f32[32,1], index: 4, kind: input, shape index: {}]   ;;  %s866_s5 = inlined_call_operand.vmem [shape: f32[32,1], index: 5, kind: input, shape index: {}]   ;;  %s867_s6 = inlined_call_operand.<no memory space> [shape: f32[1,1], index: 6, kind: input, shape index: {}]   ;;  %s868_s7 = inlined_call_operand.hbm [shape: f32[1,512], index: 7, kind: output, shape index: {}]  }
   0x1   :  { %v12_v0 = vstv %s867_s6 }
   0x2   :  { %13 = vst [vmem:[#allocation2] sm:$0x1] %v12_v0 }
   0x3   :  { %v29_v1 = vld [vmem:[%s861_s0] sm:$0xff]  ;;  %v30_v2 = vld [vmem:[%s861_s0 + $0x8] sm:$0xff]  ;;  %v704_v5 = vmov 0.0   ;;  %vm78_vm0 = vcmask 1043456   ;;  %v705_v6 = vmov 0   ;;  %v39_v10 = vld [vmem:[%s863_s2 + $0x10] sm:$0xff] }
   0x4   :  { %v31_v3 = vmax.f32 %v29_v1, 0.0  ;;  %v32_v4 = vmax.f32 %v30_v2, 0.0  ;;  %151 = vmatprep.mubr.f32.mxu0 %v704_v5  ;;  %240 = vmatprep.mubr.f32.mxu1 %v704_v5  ;;  %v37_v7 = vld [vmem:[%s863_s2] sm:$0xff]  ;;  %vm65_vm1 = vcmask 31744   ;;  %v38_v12 = vld [vmem:[%s863_s2 + $0x8] sm:$0xff]  ;;  %v40_v13 = vld [vmem:[%s863_s2 + $0x18] sm:$0xff] }
   0x5   :  { %678 = vset.pattern.permute.xlu0 %v705_v6  ;;  %679 = vset.pattern.permute.xlu1 %v705_v6  ;;  %v33_v11 = vld [vmem:[%s862_s1] sm:$0xff] }
   0x6   :  { %v63_v8 = vcombine.high %v31_v3, %v31_v3  ;;  %v64_v9 = vcombine.high %v32_v4, %v32_v4  ;;  %43 = vperm.xlu0 %678, %v37_v7   ;;  %53 = vperm.xlu1 %679, %v39_v10  }
   0x8   :  { %638 = vmatprep.subr.msk.mxu0 %vm78_vm0, %v63_v8  ;;  %644 = vmatprep.subr.msk.mxu1 %vm78_vm0, %v64_v9 }
   0x9   :  { %639 = vmatpush1.msk.msra.mxu0 %vm78_vm0, %v31_v3  ;;  %645 = vmatpush1.msk.msra.mxu1 %vm78_vm0, %v32_v4 }
   0xa   :  { %14 = vsyncpa [#allocation4], 0  ;;  %640 = vmatmul.mubr.msk.f32.vlgmr.msra.gmra.mrb[0].mxu0 %vm65_vm1, %v33_v11  ;;  %646 = vmatmul.mubr.msk.f32.vlgmr.msra.gmra.mrb[0].mxu1 %vm65_vm1, %v33_v11  ;;  %v34_v14 = vld [vmem:[%s862_s1 + $0x8] sm:$0xff]  ;;  %v285_v15 = vld [vmem:[%s865_s4] sm:$0xff]  ;;  %vm309_vm2 = vcmask 261120  }
   0xb   :  { %157 = vmatprep.mubr.f32.mxu0 %v704_v5  ;;  %246 = vmatprep.mubr.f32.mxu1 %v704_v5  ;;  %v286_v16 = vld [vmem:[%s865_s4 + $0x8] sm:$0xff]  ;;  %v35_v17 = vld [vmem:[%s862_s1 + $0x10] sm:$0xff]  ;;  %v500_v19 = vld [vmem:[%s866_s5] sm:$0xff] }
   0xc   :  { %48 = vperm.xlu0 %678, %v38_v12   ;;  %58 = vperm.xlu1 %679, %v40_v13   ;;  %v287_v18 = vld [vmem:[%s865_s4 + $0x10] sm:$0xff]  ;;  %v36_v20 = vld [vmem:[%s862_s1 + $0x18] sm:$0xff]  ;;  %v501_v21 = vld [vmem:[%s866_s5 + $0x8] sm:$0xff] }
   0xd   :  { %v288_v22 = vld [vmem:[%s865_s4 + $0x18] sm:$0xff]  ;;  %v502_v23 = vld [vmem:[%s866_s5 + $0x10] sm:$0xff]  ;;  %v576_v25 = vld [vmem:[#allocation2] sm:$0x1] }
   0xe   :  { %641 = vmatmul.mubr.msk.f32.gmra.mrb[2].mxu0 %vm65_vm1, %v34_v14  ;;  %647 = vmatmul.mubr.msk.f32.gmra.mrb[2].mxu1 %vm65_vm1, %v34_v14  ;;  %v503_v24 = vld [vmem:[%s866_s5 + $0x18] sm:$0xff] }
   0xf   :  { %163 = vmatprep.mubr.f32.mxu0 %v704_v5  ;;  %252 = vmatprep.mubr.f32.mxu1 %v704_v5 }
  0x10   :  { %291 = vperm.xlu0 %678, %v285_v15   ;;  %296 = vperm.xlu1 %679, %v286_v16  }
  0x12   :  { %642 = vmatmul.mubr.msk.f32.gmra.mrb[4].mxu0 %vm65_vm1, %v35_v17  ;;  %648 = vmatmul.mubr.msk.f32.gmra.mrb[4].mxu1 %vm65_vm1, %v35_v17 }
  0x13   :  { %169 = vmatprep.mubr.f32.mxu0 %v704_v5  ;;  %258 = vmatprep.mubr.f32.mxu1 %v704_v5 }
  0x14   :  { %301 = vperm.xlu0 %678, %v287_v18   ;;  %506 = vperm.xlu1 %679, %v500_v19  }
  0x16   :  { %643 = vmatmul.mubr.msk.f32.gmra.mrb[6].mxu0 %vm65_vm1, %v36_v20  ;;  %649 = vmatmul.mubr.msk.f32.gmra.mrb[6].mxu1 %vm65_vm1, %v36_v20 }
  0x17   :  { %386 = vmatprep.mubr.f32.mxu0 %v704_v5  ;;  %475 = vmatprep.mubr.f32.mxu1 %v704_v5 }
  0x18   :  { %511 = vperm.xlu0 %678, %v501_v21   ;;  %306 = vperm.xlu1 %679, %v288_v22  }
  0x1c   :  { %516 = vperm.xlu0 %678, %v502_v23   ;;  %521 = vperm.xlu1 %679, %v503_v24   ;;  %v281_v23 = vld [vmem:[%s864_s3] sm:$0xff]  ;;  %v282_v24 = vld [vmem:[%s864_s3 + $0x8] sm:$0xff] }
  0x20   :  { %579 = vperm.xlu0 %678, %v576_v25   ;;  %v283_v25 = vld [vmem:[%s864_s3 + $0x10] sm:$0xff] }
  0x85   :  { %v44_v26 = vpop.permute.xlu0 %43  ;;  %v54_v32 = vpop.permute.xlu1 %53 }
  0x8b   :  { %v49_v31 = vpop.permute.xlu0 %48  ;;  %v59_v61 = vpop.permute.xlu1 %58 }
  0xdd   :  { %v153_v27 = vpop.f32.mrb[0].mxu0  ;;  %v242_v28 = vpop.f32.mrb[0].mxu1 }
  0xde   :  { %v155_v29 = vpop.f32.mrb[1].mxu0  ;;  %v244_v30 = vpop.f32.mrb[1].mxu1  ;;  %v154_v33 = vadd.f32 %v153_v27, %v44_v26  ;;  %v243_v34 = vadd.f32 %v242_v28, %v44_v26 }
  0xdf   :  { %v156_v35 = vadd.f32 %v155_v29, %v44_v26  ;;  %v245_v36 = vadd.f32 %v244_v30, %v44_v26  ;;  %v284_v26 = vld [vmem:[%s864_s3 + $0x18] sm:$0xff]  ;;  %v292_v27 = vpop.permute.xlu0 %291  ;;  %v297_v28 = vpop.permute.xlu1 %296  ;;  %s707_s3 = smov [#allocation3]  }
  0xe0   :  { %v265_v45 = vmax.f32 %v154_v33, 0.0  ;;  %v267_v46 = vmax.f32 %v243_v34, 0.0  ;;  %s630_s16 = sshll.u32 %s707_s3, 4  ;;  %s631_s16 = int_to_ptr.vmem [resolvable:$true] %s630_s16 }
  0xe1   :  { %v159_v37 = vpop.f32.mrb[2].mxu0  ;;  %v248_v38 = vpop.f32.mrb[2].mxu1  ;;  %v266_v49 = vmax.f32 %v156_v35, 0.0  ;;  %v268_v50 = vmax.f32 %v245_v36, 0.0  ;;  %s680_s17 = scalar_lea.vmem %s631_s16, 64  ;;  %p685_p1 = scmp.lt.s32.totalorder %s631_s16, %s631_s16 }
  0xe2   :  { %v160_v39 = vadd.f32 %v159_v37, %v49_v31  ;;  %v249_v40 = vadd.f32 %v248_v38, %v49_v31  ;;  %v161_v41 = vpop.f32.mrb[3].mxu0  ;;  %v250_v42 = vpop.f32.mrb[3].mxu1  ;;  %p681_p0 = scmp.ne.s32.totalorder %s631_s16, %s680_s17  ;;  %p686_p2 = scmp.lt.s32.totalorder %s680_s17, %s680_s17 }
  0xe3   :  { %v162_v43 = vadd.f32 %v161_v41, %v49_v31  ;;  %v251_v44 = vadd.f32 %v250_v42, %v49_v31  ;;  %v302_v29 = vpop.permute.xlu0 %301  ;;  %v507_v30 = vpop.permute.xlu1 %506 }
  0xe4   :  { %v269_v47 = vmax.f32 %v160_v39, 0.0  ;;  %v271_v48 = vmax.f32 %v249_v40, 0.0  ;;  %p687_p3 = por %p686_p2, %p685_p1 }
  0xe5   :  { %v270_v51 = vmax.f32 %v162_v43, 0.0  ;;  %v272_v52 = vmax.f32 %v251_v44, 0.0  ;;  %v165_v53 = vpop.f32.mrb[4].mxu0  ;;  %v254_v54 = vpop.f32.mrb[4].mxu1 }
  0xe6   :  { %v660_v55 = vpack.c.bf16 %v269_v47, %v265_v45  ;;  %v668_v56 = vpack.c.bf16 %v271_v48, %v267_v46  ;;  %v167_v57 = vpop.f32.mrb[5].mxu0  ;;  %v256_v58 = vpop.f32.mrb[5].mxu1  ;;  %v166_v62 = vadd.f32 %v165_v53, %v54_v32  ;;  %v255_v63 = vadd.f32 %v254_v54, %v54_v32  ;;  %p688_p4 = pnand %p687_p3, %p681_p0 }
  0xe7   :  { %v658_v59 = vpack.c.bf16 %v270_v51, %v266_v49  ;;  %v666_v60 = vpack.c.bf16 %v272_v52, %v268_v50  ;;  %v168_v0 = vadd.f32 %v167_v57, %v54_v32  ;;  %v257_v1 = vadd.f32 %v256_v58, %v54_v32  ;;  %v512_v35 = vpop.permute.xlu0 %511  ;;  %v307_v47 = vpop.permute.xlu1 %306 }
  0xe8   :  { %v273_v11 = vmax.f32 %v166_v62, 0.0  ;;  %v275_v12 = vmax.f32 %v255_v63, 0.0 }
  0xe9   :  { %v171_v2 = vpop.f32.mrb[6].mxu0  ;;  %v260_v3 = vpop.f32.mrb[6].mxu1  ;;  %659 = vmatprep.subr.bf16.mxu0 %v658_v59  ;;  %667 = vmatprep.subr.bf16.mxu1 %v666_v60  ;;  %v274_v15 = vmax.f32 %v168_v0, 0.0  ;;  %v276_v16 = vmax.f32 %v257_v1, 0.0 }
  0xea   :  { %v172_v4 = vadd.f32 %v171_v2, %v59_v61  ;;  %v261_v6 = vadd.f32 %v260_v3, %v59_v61  ;;  %v173_v7 = vpop.f32.mrb[7].mxu0  ;;  %v262_v8 = vpop.f32.mrb[7].mxu1  ;;  %661 = vmatpush1.bf16.msra.mxu0 %v660_v55  ;;  %669 = vmatpush1.bf16.msra.mxu1 %v668_v56 }
  0xeb   :  { %v174_v9 = vadd.f32 %v173_v7, %v59_v61  ;;  %v263_v10 = vadd.f32 %v262_v8, %v59_v61  ;;  %v517_v0 = vpop.permute.xlu0 %516 }
  0xec   :  { %v277_v13 = vmax.f32 %v172_v4, 0.0  ;;  %v279_v14 = vmax.f32 %v261_v6, 0.0 }
  0xed   :  { %v278_v17 = vmax.f32 %v174_v9, 0.0  ;;  %v280_v18 = vmax.f32 %v263_v10, 0.0 }
  0xee   :  { %v664_v19 = vpack.c.bf16 %v277_v13, %v273_v11  ;;  %v672_v20 = vpack.c.bf16 %v279_v14, %v275_v12 }
  0xef   :  { %v662_v21 = vpack.c.bf16 %v278_v17, %v274_v15  ;;  %v670_v22 = vpack.c.bf16 %v280_v18, %v276_v16  ;;  %v522_v18 = vpop.permute.xlu1 %521 }
  0xf1   :  { %663 = vmatprep.subr.bf16.mxu0 %v662_v21  ;;  %671 = vmatprep.subr.bf16.mxu1 %v670_v22 }
  0xf2   :  { %665 = vmatpush1.bf16.msra.mxu0 %v664_v19  ;;  %673 = vmatpush1.bf16.msra.mxu1 %v672_v20 }
  0xf5   :  { %650 = vmatmul.mubr.msk.f32.vlgmr.msra.gmra.mrb[8].mxu0 %vm309_vm2, %v281_v23  ;;  %654 = vmatmul.mubr.msk.f32.vlgmr.msra.gmra.mrb[8].mxu1 %vm309_vm2, %v281_v23 }
  0xf6   :  { %392 = vmatprep.mubr.f32.mxu0 %v704_v5  ;;  %481 = vmatprep.mubr.f32.mxu1 %v704_v5 }
  0xf9   :  { %651 = vmatmul.mubr.msk.f32.gmra.mrb[10].mxu0 %vm309_vm2, %v282_v24  ;;  %655 = vmatmul.mubr.msk.f32.gmra.mrb[10].mxu1 %vm309_vm2, %v282_v24 }
  0xfa   :  { %398 = vmatprep.mubr.f32.mxu0 %v704_v5  ;;  %487 = vmatprep.mubr.f32.mxu1 %v704_v5 }
  0xfd   :  { %652 = vmatmul.mubr.msk.f32.gmra.mrb[12].mxu0 %vm309_vm2, %v283_v25  ;;  %656 = vmatmul.mubr.msk.f32.gmra.mrb[12].mxu1 %vm309_vm2, %v283_v25 }
  0xfe   :  { %404 = vmatprep.mubr.f32.mxu0 %v704_v5  ;;  %493 = vmatprep.mubr.f32.mxu1 %v704_v5 }
 0x101   :  { %653 = vmatmul.mubr.msk.f32.gmra.mrb[14].mxu0 %vm309_vm2, %v284_v26  ;;  %657 = vmatmul.mubr.msk.f32.gmra.mrb[14].mxu1 %vm309_vm2, %v284_v26 }
 0x1c8   :  { %v388_v31 = vpop.f32.mrb[8].mxu0  ;;  %v477_v32 = vpop.f32.mrb[8].mxu1 }
 0x1c9   :  { %v390_v33 = vpop.f32.mrb[9].mxu0  ;;  %v479_v34 = vpop.f32.mrb[9].mxu1  ;;  %v389_v36 = vadd.f32 %v388_v31, %v292_v27  ;;  %v478_v37 = vadd.f32 %v477_v32, %v292_v27 }
 0x1ca   :  { %v391_v5 = vadd.f32 %v390_v33, %v292_v27  ;;  %v480_v38 = vadd.f32 %v479_v34, %v292_v27  ;;  %v582_v27 = vlaneseq }
 0x1cb   :  { %v524_v48 = vmul.f32 %v507_v30, %v389_v36  ;;  %v526_v49 = vmul.f32 %v507_v30, %v478_v37 }
 0x1cc   :  { %v394_v39 = vpop.f32.mrb[10].mxu0  ;;  %v483_v40 = vpop.f32.mrb[10].mxu1  ;;  %v525_v52 = vmul.f32 %v507_v30, %v391_v5  ;;  %v527_v53 = vmul.f32 %v507_v30, %v480_v38  ;;  %v583_v36 = vshrl.u32 %v582_v27, 7  ;;  %vm621_vm3 = vcmp.lt.s32.totalorder %v582_v27, 512 }
 0x1cd   :  { %v395_v41 = vadd.f32 %v394_v39, %v297_v28  ;;  %v484_v42 = vadd.f32 %v483_v40, %v297_v28  ;;  %v396_v43 = vpop.f32.mrb[11].mxu0  ;;  %v485_v44 = vpop.f32.mrb[11].mxu1 }
 0x1ce   :  { %v397_v45 = vadd.f32 %v396_v43, %v297_v28  ;;  %v486_v46 = vadd.f32 %v485_v44, %v297_v28 }
 0x1cf   :  { %v528_v50 = vmul.f32 %v512_v35, %v395_v41  ;;  %v530_v51 = vmul.f32 %v512_v35, %v484_v42  ;;  %v706_v42 = vmov 1966171168  }
 0x1d0   :  { %v529_v54 = vmul.f32 %v512_v35, %v397_v45  ;;  %v531_v55 = vmul.f32 %v512_v35, %v486_v46  ;;  %v400_v56 = vpop.f32.mrb[12].mxu0  ;;  %v489_v57 = vpop.f32.mrb[12].mxu1  ;;  %v597_v43 = vunpack.c.l.s4 %v706_v42  ;;  %v584_v46 = vsub.s32 0, %v583_v36 }
 0x1d1   :  { %v540_v58 = vadd.f32 %v528_v50, %v524_v48  ;;  %v558_v59 = vadd.f32 %v530_v51, %v526_v49  ;;  %v401_v60 = vadd.f32 %v400_v56, %v302_v29  ;;  %v490_v61 = vadd.f32 %v489_v57, %v302_v29  ;;  %v402_v62 = vpop.f32.mrb[13].mxu0  ;;  %v491_v63 = vpop.f32.mrb[13].mxu1 }
 0x1d2   :  { %v549_v1 = vadd.f32 %v529_v54, %v525_v52  ;;  %v567_v2 = vadd.f32 %v531_v55, %v527_v53  ;;  %v403_v3 = vadd.f32 %v402_v62, %v302_v29  ;;  %v492_v4 = vadd.f32 %v491_v63, %v302_v29  ;;  %v580_v49 = vpop.permute.xlu0 %579 }
 0x1d3   :  { %v532_v6 = vmul.f32 %v517_v0, %v401_v60  ;;  %v534_v7 = vmul.f32 %v517_v0, %v490_v61  ;;  %v598_v54 = vunpack.c.0.s8 %v597_v43  ;;  %v585_v57 = vrot.slane %v580_v49, %v584_v46 }
 0x1d4   :  { %v533_v8 = vmul.f32 %v517_v0, %v403_v3  ;;  %v535_v9 = vmul.f32 %v517_v0, %v492_v4  ;;  %v406_v10 = vpop.f32.mrb[14].mxu0  ;;  %v495_v11 = vpop.f32.mrb[14].mxu1 }
 0x1d5   :  { %v541_v12 = vadd.f32 %v540_v58, %v532_v6  ;;  %v559_v13 = vadd.f32 %v558_v59, %v534_v7  ;;  %v407_v14 = vadd.f32 %v406_v10, %v307_v47  ;;  %v496_v15 = vadd.f32 %v495_v11, %v307_v47  ;;  %v408_v16 = vpop.f32.mrb[15].mxu0  ;;  %v497_v17 = vpop.f32.mrb[15].mxu1 }
 0x1d6   :  { %v550_v19 = vadd.f32 %v549_v1, %v533_v8  ;;  %v568_v20 = vadd.f32 %v567_v2, %v535_v9  ;;  %v409_v21 = vadd.f32 %v408_v16, %v307_v47  ;;  %v498_v22 = vadd.f32 %v497_v17, %v307_v47 }
 0x1d7   :  { %v536_v23 = vmul.f32 %v522_v18, %v407_v14  ;;  %v538_v24 = vmul.f32 %v522_v18, %v496_v15  ;;  %v601_v0 = vsub.s32 %v598_v54, %v583_v36 }
 0x1d8   :  { %v537_v25 = vmul.f32 %v522_v18, %v409_v21  ;;  %v539_v26 = vmul.f32 %v522_v18, %v498_v22 }
 0x1d9   :  { %v542_v28 = vadd.f32 %v541_v12, %v536_v23  ;;  %v560_v29 = vadd.f32 %v559_v13, %v538_v24 }
 0x1da   :  { %v551_v30 = vadd.f32 %v550_v19, %v537_v25  ;;  %v569_v31 = vadd.f32 %v568_v20, %v539_v26 }
 0x1db   :  { %v543_v32 = vrot.slane %v542_v28, 4  ;;  %v561_v33 = vrot.slane %v560_v29, 4 }
 0x1dc   :  { %v552_v34 = vrot.slane %v551_v30, 4  ;;  %v570_v35 = vrot.slane %v569_v31, 4 }
 0x1dd   :  { %v544_v37 = vadd.f32 %v543_v32, %v542_v28  ;;  %v562_v5 = vadd.f32 %v561_v33, %v560_v29 }
 0x1de   :  { %v553_v38 = vadd.f32 %v552_v34, %v551_v30  ;;  %v571_v39 = vadd.f32 %v570_v35, %v569_v31 }
 0x1df   :  { %v545_v40 = vrot.slane %v544_v37, 2  ;;  %v563_v41 = vrot.slane %v562_v5, 2 }
 0x1e0   :  { %v554_v44 = vrot.slane %v553_v38, 2  ;;  %v572_v45 = vrot.slane %v571_v39, 2 }
 0x1e1   :  { %v546_v47 = vadd.f32 %v545_v40, %v544_v37  ;;  %v564_v48 = vadd.f32 %v563_v41, %v562_v5 }
 0x1e2   :  { %v555_v50 = vadd.f32 %v554_v44, %v553_v38  ;;  %v573_v51 = vadd.f32 %v572_v45, %v571_v39 }
 0x1e3   :  { %v547_v52 = vrot.slane %v546_v47, 1  ;;  %v565_v53 = vrot.slane %v564_v48, 1 }
 0x1e4   :  { %v556_v55 = vrot.slane %v555_v50, 1  ;;  %v574_v56 = vrot.slane %v573_v51, 1 }
 0x1e5   :  { %v548_v58 = vadd.f32 %v547_v52, %v546_v47  ;;  %v566_v59 = vadd.f32 %v565_v53, %v564_v48 }
 0x1e6   :  { %v557_v60 = vadd.f32 %v556_v55, %v555_v50  ;;  %v575_v61 = vadd.f32 %v574_v56, %v573_v51 }
 0x1e7   :  { %v586_v62 = vadd.f32 %v585_v57, %v548_v58  ;;  %v588_v63 = vadd.f32 %v585_v57, %v566_v59 }
 0x1e8   :  { %v587_v1 = vadd.f32 %v585_v57, %v557_v60  ;;  %v589_v2 = vadd.f32 %v585_v57, %v575_v61 }
 0x1ea   :  { %v594_v3 = vcombine.low %v586_v62, %v587_v1  ;;  %v595_v4 = vcombine.low %v588_v63, %v589_v2 }
 0x1ec   :  { %v602_v6 = vrot.slane %v594_v3, %v601_v0  ;;  %v609_v7 = vrot.slane %v595_v4, %v601_v0 }
 0x1ee   :  { %v610_v8 = vcombine.low %v602_v6, %v609_v7 }
 0x1f0   :  { %v617_v9 = vrot.slane %v610_v8, %v601_v0 }
 0x1f2   :  { %623 = vst.msk [vmem:[#allocation3] sm:$0xf] %vm621_vm3, %v617_v9 }
 0x1f3   :  { %691 = shalt.err (!%p688_p4)
}
 0x1f4   :  { %s692_s19 = scalar_lea.hbm %s868_s7, 64 }
 0x1f5   :  { %p693_p5 = scmp.ne.s32.totalorder %s868_s7, %s692_s19  ;;  %p696_p6 = scmp.lt.u32.totalorder %s692_s19, %s868_s7 }
 0x1f7   :  { %p698_p7 = pnand %p696_p6, %p693_p5 }
 0x1f9   :  { %701 = shalt.err (!%p698_p7)
}
 0x1fa   :  { %633 = dma.vmem_to_hbm [thread:$0]  %s631_s16, 64, %s868_s7, [#allocation4]  }
 0x1fb   :  { %702 = dma.done.wait [#allocation4], 64  }
 0x1fc   :  { %703 = vsyncadd [#allocation4], 4294967232 }
 0x1fd   :  { %637 = vsyncpa [#allocation4], 1 }

</bundles_post_ra>
